<compile_context>
chip_gen: v6e
topology: v6e:2x2x1
jax: 0.10.0
libtpu: 0.0.40
codegen_flags: <defaults>
</compile_context>

<pallas_src>
import functools

import jax
import jax.numpy as jnp
from jax import lax
from jax.experimental import pallas as pl
from jax.experimental.pallas import tpu as pltpu


# ---------------------------------------------------------------------------
# Kernel
# ---------------------------------------------------------------------------
def _td_linear_kernel(x_ref, w_ref, thr_ref, b_ref, o_ref, *rest,
                      tk, num_k, x_resident, emit_masked, int_dtype):
    mw_ref = rest[0] if emit_masked else None

    k = pl.program_id(1)

    w = w_ref[...]                                   # [TN, TK], native weight dtype

    if int_dtype is not None:
        # |w| < thr as an integer compare in the native width: clear the sign bit and
        # compare bit patterns (ordering of non-negative IEEE floats == integer ordering).
        bits = pltpu.bitcast(w, int_dtype)
        nbits = jnp.dtype(int_dtype).itemsize * 8
        sign_mask = jnp.asarray((1 << (nbits - 1)) - 1, dtype=int_dtype)
        drop = (bits & sign_mask) < thr_ref[...]     # thr_ref already holds bitcast bits
    else:
        drop = jnp.abs(w.astype(jnp.float32)) < thr_ref[...].astype(jnp.float32)

    w_masked = jnp.where(drop, jnp.zeros_like(w), w)

    if emit_masked:
        mw_ref[...] = w_masked

    if x_resident and num_k > 1:
        # x is resident with the full K extent; slice the current K tile (lane-aligned).
        xk = x_ref[:, pl.ds(pl.multiple_of(k * tk, 128), tk)]
    else:
        xk = x_ref[...]

    # x: [B, TK], w_masked: [TN, TK] -> contract dim 1 of both (no transpose).
    acc = lax.dot_general(
        xk, w_masked,
        dimension_numbers=(((1,), (1,)), ((), ())),
        preferred_element_type=jnp.float32,
    )

    if num_k == 1:
        # K collapsed: single visit per n block, write output directly.
        o_ref[...] = acc + b_ref[...]
    else:
        # K tiled: accumulate directly into the resident f32 output block.
        @pl.when(k == 0)
        def _():
            o_ref[...] = acc + b_ref[...]

        @pl.when(k > 0)
        def _():
            o_ref[...] += acc


# ---------------------------------------------------------------------------
# Tile selection
# ---------------------------------------------------------------------------
def _vmem_capacity_bytes():
    try:
        return int(pltpu.get_tpu_info().vmem_capacity_bytes)
    except Exception:
        return 64 << 20          # conservative (v7x physical VMEM)


def _tile_candidates(total, cap):
    cands = [d for d in range(128, min(cap, total) + 1, 128) if total % d == 0]
    if total <= cap and total not in cands:
        cands.append(total)
    if not cands:
        cands = [total]
    # Prefer multiples of 256 (v6e/v7x MXU width), then larger tiles.
    return sorted(set(cands), key=lambda d: (d % 256 == 0, d), reverse=True)


def _choose_tiles(in_f, out_f, usage, budget,
                  tn_force=None, tk_force=None, x_res_force=None):
    if tn_force is not None:
        tn_cands = [int(tn_force)]
    else:
        tn_cands = _tile_candidates(out_f, 512)
        if out_f >= 256:
            # Keep >= 2 n blocks so the "parallel" axis can shard across 2 TCs (v7x).
            two = [t for t in tn_cands if out_f // t >= 2]
            if two:
                tn_cands = two

    if tk_force is not None:
        tk_cands = [int(tk_force)]
    else:
        tk_cands = _tile_candidates(in_f, 2048)
        if in_f not in tk_cands:
            tk_cands = [in_f] + tk_cands      # always consider collapsing K entirely

    x_res_opts = (True, False) if x_res_force is None else (bool(x_res_force),)

    fitting = []
    fallback = None
    for x_res in x_res_opts:
        for tn_ in tn_cands:
            for tk_ in tk_cands:
                # (8,128) BlockSpec legality: last dims must be %128 or full extent.
                if tk_ != in_f and tk_ % 128 != 0:
                    continue
                if tn_ != out_f and tn_ % 128 != 0:
                    continue
                u = usage(tn_, tk_, x_res)
                if fallback is None or u < fallback[0]:
                    fallback = (u, (tn_, tk_, x_res))
                if u <= budget:
                    key = (tk_ == in_f,                       # prefer collapsed K
                           tn_ * tk_,                         # then biggest weight tile
                           tn_ % 256 == 0 and (tk_ % 256 == 0 or tk_ == in_f),
                           x_res)
                    fitting.append((key, (tn_, tk_, x_res)))
    if fitting:
        return max(fitting)[1]
    return fallback[1]


# ---------------------------------------------------------------------------
# Wrapper
# ---------------------------------------------------------------------------
def targeted_dropout_linear(x, weight, bias, *, dropout_rate=0.5,
                            targeted_portion=0.5, is_training=True,
                            weight_dtype=None, tn=None, tk=None, x_resident=None,
                            return_masked_weight=False, vmem_budget_bytes=None):
    """Forward of TargetedDropout(targeted='weight') wrapping nn.Linear (training mode)."""
    # TODO(synk): eval-mode path additionally ANDs a Bernoulli(dropout_rate) mask with
    # the threshold mask (would use pltpu.prng_*); training mode (the module default)
    # is deterministic, so dropout_rate is unused here.
    del dropout_rate
    assert is_training, "only the training-mode (default) forward is implemented"

    batch, in_features = x.shape
    out_features, in_features_w = weight.shape
    assert in_features == in_features_w

    # int(targeted_portion * weight.shape[0]) -- exact PyTorch semantics.
    idx = int(targeted_portion * out_features)
    if idx >= out_features:
        raise ValueError("targeted_portion rounds idx to out_features; the PyTorch "
                         "reference would index out of bounds here.")

    if weight_dtype is not None:
        # Optional bandwidth knob (e.g. bf16 weight streaming); threshold is derived
        # from this same representation so the mask stays self-consistent.
        weight = weight.astype(weight_dtype)
        x = x.astype(weight_dtype)
    w_dtype = weight.dtype

    # Per-column order statistic (== torch.sort(|W|, dim=0)[0][idx], ties included,
    # since the value of the k-th order statistic is tie-independent). top_k along the
    # minor axis avoids a full sort along axis 0. Cache this if the weight is reused.
    norm_t = jnp.abs(weight.astype(jnp.float32)).T            # [in, out]
    kth = out_features - idx                                   # >= 1
    thr_f32 = lax.top_k(norm_t, kth)[0][:, -1]                 # ascending-sorted[idx]
    thr = thr_f32.astype(w_dtype).reshape(1, in_features)      # exact (value is some |w|)

    int_dtype = {jnp.dtype(jnp.float32): jnp.int32,
                 jnp.dtype(jnp.bfloat16): jnp.int16,
                 jnp.dtype(jnp.float16): jnp.int16}.get(jnp.dtype(w_dtype))
    if int_dtype is not None:
        thr_in = lax.bitcast_convert_type(thr, int_dtype)       # thr >= 0, sign bit clear
    else:
        thr_in = thr.astype(jnp.float32)

    bias2d = bias.reshape(1, out_features).astype(jnp.float32)

    # ---- VMEM budgeting / tile selection -----------------------------------
    cap = _vmem_capacity_bytes()
    budget = int(cap * 0.45) if vmem_budget_bytes is None else int(vmem_budget_bytes)

    w_bytes = jnp.dtype(w_dtype).itemsize
    x_bytes = jnp.dtype(x.dtype).itemsize
    pad_b = max(8, ((batch + 7) // 8) * 8)

    def usage(tn_, tk_, x_res):
        u = 2 * tn_ * tk_ * w_bytes                                   # weight (2 bufs)
        u += 2 * pad_b * (in_features if x_res else tk_) * x_bytes    # x
        u += 2 * 8 * tk_ * max(w_bytes, 4)                            # threshold
        u += 2 * 8 * tn_ * 4                                          # bias
        u += 2 * pad_b * tn_ * 4                                      # output
        if return_masked_weight:
            u += 2 * tn_ * tk_ * w_bytes                              # masked-W writeback
        return u

    tn_sel, tk_sel, x_res = _choose_tiles(in_features, out_features, usage, budget,
                                          tn, tk, x_resident)
    if out_features % tn_sel != 0 or in_features % tk_sel != 0:
        raise ValueError(f"tile sizes (tn={tn_sel}, tk={tk_sel}) must divide "
                         f"(out={out_features}, in={in_features})")

    grid = (out_features // tn_sel, in_features // tk_sel)
    need = usage(tn_sel, tk_sel, x_res)
    vmem_limit = int(min(max(need * 1.3 + (4 << 20), 32 << 20), cap * 0.9))

    # ---- Specs ---------------------------------------------------------------
    if x_res:
        x_spec = pl.BlockSpec((batch, in_features), lambda n, k: (0, 0))   # resident
    else:
        x_spec = pl.BlockSpec((batch, tk_sel), lambda n, k: (0, k))
    in_specs = [
        x_spec,
        pl.BlockSpec((tn_sel, tk_sel), lambda n, k: (n, k)),   # weight
        pl.BlockSpec((1, tk_sel),      lambda n, k: (0, k)),   # threshold (bits)
        pl.BlockSpec((1, tn_sel),      lambda n, k: (0, n)),   # bias
    ]
    out_shapes = [jax.ShapeDtypeStruct((batch, out_features), jnp.float32)]
    out_specs = [pl.BlockSpec((batch, tn_sel), lambda n, k: (0, n))]
    if return_masked_weight:
        out_shapes.append(jax.ShapeDtypeStruct((out_features, in_features), w_dtype))
        out_specs.append(pl.BlockSpec((tn_sel, tk_sel), lambda n, k: (n, k)))

    kernel = functools.partial(
        _td_linear_kernel,
        tk=tk_sel, num_k=grid[1], x_resident=x_res,
        emit_masked=return_masked_weight, int_dtype=int_dtype)

    results = pl.pallas_call(
        kernel,
        out_shape=tuple(out_shapes),
        grid_spec=pltpu.PrefetchScalarGridSpec(
            num_scalar_prefetch=0,
            grid=grid,
            in_specs=in_specs,
            out_specs=tuple(out_specs),
        ),
        compiler_params=pltpu.CompilerParams(
            dimension_semantics=("parallel", "arbitrary"),
            vmem_limit_bytes=vmem_limit,
        ),
    )(x, weight, thr_in, bias2d)

    if return_masked_weight:
        return results[0], results[1]
    return results[0]


# ---------------------------------------------------------------------------
# Pure-JAX reference (mirrors the PyTorch training-mode forward)
# ---------------------------------------------------------------------------
def _reference(x, weight, bias, targeted_portion=0.5):
    w = weight.astype(jnp.float32)
    norm = jnp.abs(w)
    idx = int(targeted_portion * w.shape[0])
    threshold = jnp.sort(norm, axis=0)[idx]
    mask = norm < threshold[None, :]
    w_masked = (1.0 - mask.astype(jnp.float32)) * w
    out = x.astype(jnp.float32) @ w_masked.T + bias.astype(jnp.float32)
    return out, w_masked


if __name__ == "__main__":
    key = jax.random.PRNGKey(0)
    kx, kw, kb = jax.random.split(key, 3)

    batch, in_features, out_features = 8, 256, 256
    x = jax.random.normal(kx, (batch, in_features), dtype=jnp.float32)
    weight = jax.random.normal(kw, (out_features, in_features), dtype=jnp.float32) * 0.1
    bias = jax.random.normal(kb, (out_features,), dtype=jnp.float32) * 0.01

    ref_out, ref_w = _reference(x, weight, bias, targeted_portion=0.5)

    # Path A (auto): K axis collapsed, x resident, no accumulator.
    out_a = targeted_dropout_linear(x, weight, bias,
                                    dropout_rate=0.5, targeted_portion=0.5)

    # Path B (forced small tiles): exercises the K-tiled accumulate-into-output path,
    # the resident-x pl.ds slicing, and the masked-weight writeback.
    out_b, w_masked = targeted_dropout_linear(x, weight, bias,
                                              dropout_rate=0.5, targeted_portion=0.5,
                                              tn=128, tk=128,
                                              return_masked_weight=True)
    jax.block_until_ready((out_a, out_b, w_masked))

    assert jnp.allclose(w_masked, ref_w, atol=1e-6), "masked weight mismatch"
    assert jnp.allclose(out_a, ref_out, atol=1e-4, rtol=1e-4), "output mismatch (K-collapsed)"
    assert jnp.allclose(out_b, ref_out, atol=1e-4, rtol=1e-4), "output mismatch (K-tiled)"
    print("KERNEL_OK")
</pallas_src>

<mosaic_0001>
module attributes {stable_mosaic.version = 11 : i64} {
  func.func @_td_linear_kernel(%arg0: i32, %arg1: i32, %arg2: memref<8x256xf32, #tpu.memory_space<vmem>>, %arg3: memref<128x256xf32, #tpu.memory_space<vmem>>, %arg4: memref<1x256xi32, #tpu.memory_space<vmem>>, %arg5: memref<1x128xf32, #tpu.memory_space<vmem>>, %arg6: memref<8x128xf32, #tpu.memory_space<vmem>>) attributes {dimension_semantics = [#tpu.dimension_semantics<parallel>, #tpu.dimension_semantics<arbitrary>], iteration_bounds = array<i64: 2, 1>, scalar_prefetch = 0 : i64, scratch_operands = 0 : i64, tpu.core_type = #tpu.core_type<tc>, window_params = [{pipeline_mode = #tpu.pipeline_mode<synchronous>, transform_indices = @transform_0, window_bounds = array<i64: 8, 256>}, {transform_indices = @transform_1, window_bounds = array<i64: 128, 256>}, {transform_indices = @transform_2, window_bounds = array<i64: 1, 256>}, {transform_indices = @transform_3, window_bounds = array<i64: 1, 128>}, {transform_indices = @transform_4, window_bounds = array<i64: 8, 128>}]} {
    %c0 = arith.constant 0 : index
    %c0_0 = arith.constant 0 : index
    %0 = vector.load %arg3[%c0, %c0_0] : memref<128x256xf32, #tpu.memory_space<vmem>>, vector<128x256xf32>
    %1 = tpu.bitcast %0 : vector<128x256xf32> -> vector<128x256xi32>
    %c2147483647_i32 = arith.constant 2147483647 : i32
    %2 = vector.broadcast %c2147483647_i32 : i32 to vector<128x256xi32>
    %3 = arith.andi %1, %2 : vector<128x256xi32>
    %c0_1 = arith.constant 0 : index
    %c0_2 = arith.constant 0 : index
    %4 = vector.load %arg4[%c0_1, %c0_2] : memref<1x256xi32, #tpu.memory_space<vmem>>, vector<1x256xi32>
    %5 = vector.broadcast %4 : vector<1x256xi32> to vector<128x256xi32>
    %6 = arith.cmpi slt, %3, %5 : vector<128x256xi32>
    %cst = arith.constant 0.000000e+00 : f32
    %7 = vector.broadcast %cst : f32 to vector<128x256xf32>
    %8 = arith.select %6, %7, %0 : vector<128x256xi1>, vector<128x256xf32>
    %c0_3 = arith.constant 0 : index
    %c0_4 = arith.constant 0 : index
    %9 = vector.load %arg2[%c0_3, %c0_4] : memref<8x256xf32, #tpu.memory_space<vmem>>, vector<8x256xf32>
    %cst_5 = arith.constant dense<0.000000e+00> : vector<8x128xf32>
    %10 = tpu.matmul %9, %8, %cst_5 {dimension_numbers = #tpu.dot_dimension_numbers<[1], [1], [0], [0], [0, 0, 1, 0], [], []>} : vector<8x256xf32>, vector<128x256xf32>, vector<8x128xf32> -> vector<8x128xf32>
    %c0_6 = arith.constant 0 : index
    %c0_7 = arith.constant 0 : index
    %11 = vector.load %arg5[%c0_6, %c0_7] : memref<1x128xf32, #tpu.memory_space<vmem>>, vector<1x128xf32>
    %12 = vector.broadcast %11 : vector<1x128xf32> to vector<8x128xf32>
    %13 = arith.addf %10, %12 : vector<8x128xf32>
    %c0_8 = arith.constant 0 : index
    %c0_9 = arith.constant 0 : index
    %14 = vector.load %arg6[%c0_8, %c0_9] : memref<8x128xf32, #tpu.memory_space<vmem>>, vector<8x128xf32>
    tpu.vector_store %arg6[%c0_8, %c0_9], %13 {strides = array<i32>} : memref<8x128xf32, #tpu.memory_space<vmem>>, vector<8x128xf32>,
    return
  }
  func.func @transform_0(%arg0: i32, %arg1: i32) -> (i32, i32) {
    %c0_i32 = arith.constant 0 : i32
    %c0_i32_0 = arith.constant 0 : i32
    %c0_i32_1 = arith.constant 0 : i32
    return %c0_i32, %c0_i32_0 : i32, i32
  }
  func.func @transform_1(%arg0: i32, %arg1: i32) -> (i32, i32) {
    %c0_i32 = arith.constant 0 : i32
    return %arg0, %arg1 : i32, i32
  }
  func.func @transform_2(%arg0: i32, %arg1: i32) -> (i32, i32) {
    %c0_i32 = arith.constant 0 : i32
    %c0_i32_0 = arith.constant 0 : i32
    return %c0_i32, %arg1 : i32, i32
  }
  func.func @transform_3(%arg0: i32, %arg1: i32) -> (i32, i32) {
    %c0_i32 = arith.constant 0 : i32
    %c0_i32_0 = arith.constant 0 : i32
    return %c0_i32, %arg0 : i32, i32
  }
  func.func @transform_4(%arg0: i32, %arg1: i32) -> (i32, i32) {
    %c0_i32 = arith.constant 0 : i32
    %c0_i32_0 = arith.constant 0 : i32
    return %c0_i32, %arg0 : i32, i32
  }
}

</mosaic_0001>

<bundles_post_ra>
// kernel: tpu_custom_call.1
= control target key start
LH: loop header
LB: loop body
LE: loop exit
PB: predicated region body
PF: predicated region fallthrough
CT: control target
= control target key end

     0   :  { %s1268_s0 = inlined_call_operand.hbm [shape: f32[8,256], index: 0, kind: input, shape index: {}]   ;;  %s1269_s1 = inlined_call_operand.hbm [shape: f32[256,256], index: 1, kind: input, shape index: {}]   ;;  %s1270_s2 = inlined_call_operand.vmem [shape: s32[1,256], index: 2, kind: input, shape index: {}]   ;;  %s1271_s3 = inlined_call_operand.vmem [shape: f32[1,256], index: 3, kind: input, shape index: {}]   ;;  %s1272_s4 = inlined_call_operand.hbm [shape: f32[8,256], index: 4, kind: output, shape index: {}]  }
   0x1   :  { %1276 = sst [smem:[#allocation12_spill]] %s1268_s0 }
   0x2   :  { %9 = vsyncpa [#allocation3], 0 }
   0x3   :  { %10 = vsyncpa [#allocation6], 0 }
   0x4   :  { %12 = vsyncpa [#allocation6 + $0x1], 0 }
   0x5   :  { %13 = vsyncpa [#allocation4], 0 }
   0x6   :  { %15 = vsyncpa [#allocation4 + $0x1], 0  ;;  %s1020_s15 = smov 0   ;;  %s1022_s16 = smov 0  }
   0x7   :  { %s1024_s17 = smov 0   ;;  %s1026_s18 = smov 0  }
   0x8   :  { %s1028_s19 = smov 0   ;;  %s1030_s20 = smov 0  }
   0x9 LB: > { %s658_s21 = sadd.s32 4294967295, %s988_s20   ;;  %s659_s22 = sadd.s32 4294967294, %s988_s20   ;;  %s988_s20 = sphi %s1030_s20, %s21_s20   ;;  %s984_s19 = sphi %s1028_s19, %s1296_s19   ;;  %s980_s18 = sphi %s1026_s18, %s1295_s18   ;;  %s976_s17 = sphi %s1024_s17, %s1294_s17   ;;  %s972_s16 = sphi %s1022_s16, %s1293_s16   ;;  %s968_s15 = sphi %s1020_s15, %s1292_s15  }
   0xa   : > { %s63_s23 = sadd.s32 1, %s976_s17  ;;  %p70_p0 = scmp.ne.s32.totalorder %s976_s17, %s972_s16 }
   0xb   : > { %p71_p1 = scmp.eq.s32.totalorder %s988_s20, 0  ;;  %p76_p2 = scmp.ne.s32.totalorder %s972_s16, %s968_s15 }
   0xc   : > { %p1058_p3 = scmp.eq.s32.totalorder %s658_s21, 0  ;;  %p152_p4 = scmp.eq.s32.totalorder %s658_s21, 1 }
   0xd   : > { %p1062_p5 = por %p71_p1, %p70_p0  ;;  %p158_p6 = scmp.eq.s32.totalorder %s659_s22, 1 }
   0xe   : > { %p1068_p7 = por %p1058_p3, %p76_p2  ;;  %p1072_p8 = por %p152_p4, %p70_p0 }
   0xf   : > { %p1076_p9 = por %p158_p6, %p76_p2  ;;  %p660_p10 = scmp.ge.s32.totalorder %s988_s20, 1 }
  0x10   : > { %s1279_s26 = scalar_select %p1068_p7, 1, 0 }
  0x11   : > { %s1280_s27 = scalar_select %p1072_p8, 1, 0 }
  0x12   : > { %s1281_s28 = scalar_select %p1076_p9, 1, 0 }
  0x13   : > { %p165_p11 = scmp.lt.s32.totalorder %s988_s20, 3  ;;  %s990_s30 = smov [#allocation2]  }
  0x14   : > { %s178_s5 = sshll.u32 %s990_s30, 4  ;;  %p796_p1 = scmp.lt.s32.totalorder %s988_s20, 2  ;;  %s179_s5 = int_to_ptr.vmem [resolvable:$true] %s178_s5 }
  0x15   : > { %p1083_p13 = pnand %p660_p10, %p165_p11  ;;  %s33_s8 = sadd.s32 1, %s984_s19 }
  0x16   : > { %p1092_p4 = pnand %p796_p1, %p1062_p5  ;;  %p35_p6 = scmp.ge.s32.totalorder %s33_s8, 2 }
  0x17   : > { %p783_p0 = pneg %p1083_p13  ;;  %s197_s9 = sand.u32 1, %s976_s17  }
  0x18   : > { %s861_s10 = scalar_lea.vmem %s179_s5, 256  ;;  %p869_p8 = scmp.lt.s32.totalorder %s179_s5, %s179_s5 }
  0x19   : > { %p1098_p2 = pnand %p783_p0, %p1058_p3  ;;  %p862_p11 = scmp.ne.s32.totalorder %s179_s5, %s861_s10 }
  0x1a   : > { %p870_p5 = scmp.lt.s32.totalorder %s861_s10, %s861_s10 }
  0x1b   : > { %p852_p10 = pneg %p1098_p2 }
  0x1c   : > { %p871_p1 = por %p870_p5, %p869_p8 }
  0x1d   : > { %p864_p12 = pnand %p862_p11, %p852_p10 }
  0x1f   : > { %p865_p9 = pneg %p864_p12 }
  0x21   : > { %p872_p7 = pnand %p871_p1, %p865_p9 }
  0x23   : > { %875 = shalt.err (!%p872_p7)
}
  0x24   : > { %s1285_s0 = sld [smem:[#allocation12_spill]]  ;;  %s1298_s8 = smov (%p35_p6, %s33_s8), 0 }
  0x25   : > { %1286 = sst [smem:[#allocation11_spill]] %s1298_s8  ;;  %s664_s13 = sshll.u32 %s197_s9, 8 }
  0x26   : > { %s58_s14 = ssub.s32 %s984_s19, %s1298_s8  ;;  %s742_s21 = sshll.u32 %s984_s19, 12 }
  0x27   : > { %p61_p12 = scmp.eq.s32.totalorder %s58_s14, 0  ;;  %s210_s30 = scalar_lea.hbm %s1269_s1, %s742_s21 }
  0x28   : > { %s201_s7 = scalar_lea.vmem [#allocation5], %s664_s13  ;;  %s198_s12 = scalar_lea.sflag [#allocation6], %s197_s9 }
  0x29   : > { %s211_s10 = sshll.u32 %s201_s7, 4  ;;  %p878_p7 = pneg %p1092_p4  ;;  %s212_s10 = int_to_ptr.vmem [resolvable:$true] %s211_s10 }
  0x2a   : > { %786 = dma.hbm_to_vmem [thread:$0]  (!%p1098_p2), %s1285_s0, 256, %s179_s5, [#allocation3]  }
  0x2b   : > { %s1122_s11 = scalar_select %p61_p12, %s976_s17, %s63_s23  }
  0x2c   : > { %s889_s5 = scalar_lea.vmem %s212_s10, 4096  ;;  %s991_s0 = smov [#allocation5]  }
  0x2d   : > { %p890_p8 = scmp.ne.s32.totalorder %s212_s10, %s889_s5  ;;  %s894_s14 = sshll.u32 %s991_s0, 4  ;;  %s895_s14 = int_to_ptr.vmem [resolvable:$false] %s894_s14 }
  0x2e   : > { %s896_s8 = scalar_lea.vmem %s895_s14, 8192  ;;  %p897_p2 = scmp.lt.s32.totalorder %s212_s10, %s895_s14 }
  0x2f   : > { %p892_p9 = pnand %p890_p8, %p878_p7  ;;  %p898_p6 = scmp.lt.s32.totalorder %s896_s8, %s889_s5 }
  0x31   : > { %p893_p0 = pneg %p892_p9  ;;  %p899_p10 = por %p898_p6, %p897_p2 }
  0x33   : > { %p900_p11 = pnand %p899_p10, %p893_p0 }
  0x35   : > { %903 = shalt.err (!%p900_p11)
}
  0x36   : > { %s992_s13 = smov 256   ;;  %s993_s23 = smov 16  }
  0x37   : > { %790 = dma.hbm_to_vmem [thread:$0]  (!%p1092_p4), %s210_s30, 4096, %s212_s10, %s198_s12, %s992_s13, %s992_s13, %s993_s23  }
  0x38   : > { %229 = sbr.rel (%p1083_p13) target bundleno = 347 (0x15b), region = 36 }
  0x3d   : > { %955 = dma.done.wait (%p1058_p3), [#allocation3], 256  }
  0x3e   : > { %957 = vsyncadd (%p1058_p3), [#allocation3], 4294967040  ;;  %s1135_s0 = sand.u32 1, %s972_s16   ;;  %p1287_p4 = scmp.ne.s32.totalorder %s1279_s26, 0 }
  0x3f   : > { %s670_s8 = sshll.u32 %s1135_s0, 8  ;;  %s236_s9 = scalar_lea.sflag [#allocation6], %s1135_s0 }
  0x40   : > { %s1139_s21 = scalar_lea.vmem [#allocation5], %s670_s8 }
  0x41   : > { %959 = dma.done.wait (%p1287_p4), %s236_s9, 4096  }
  0x42   : > { %961 = vsyncadd (%p1287_p4), %s236_s9, 4294963200  ;;  %v378_v0 = vlaneseq  ;;  %v312_v4 = vld [vmem:[%s1139_s21 + $0xf8] sm:$0xff]  ;;  %v377_v5 = vld [vmem:[%s1270_s2] sm:$0x3]  ;;  %p278_p3 = scmp.lt.s32.totalorder %s980_s18, 1  ;;  %s671_s6 = sshll.u32 %s1135_s0, 3 }
  0x43   : > { %v311_v6 = vld [vmem:[%s1139_s21 + $0xf0] sm:$0xff]  ;;  %v376_v7 = vand.u32 2147483647, %v312_v4  ;;  %v310_v11 = vld [vmem:[%s1139_s21 + $0xe8] sm:$0xff]  ;;  %v309_v12 = vld [vmem:[%s1139_s21 + $0xe0] sm:$0xff]  ;;  %s738_s7 = sshll.u32 %s980_s18, 7 }
  0x44   : > { %v379_v1 = vshrl.u32 %v378_v0, 7  ;;  %v375_v9 = vand.u32 2147483647, %v311_v6  ;;  %v374_v13 = vand.u32 2147483647, %v310_v11  ;;  %v308_v15 = vld [vmem:[%s1139_s21 + $0xd8] sm:$0xff]  ;;  %s1226_s13 = scalar_lea.hbm %s1272_s4, %s738_s7 }
  0x45   : > { %v373_v14 = vand.u32 2147483647, %v309_v12  ;;  %v372_v16 = vand.u32 2147483647, %v308_v15  ;;  %v307_v17 = vld [vmem:[%s1139_s21 + $0xd0] sm:$0xff]  ;;  %v306_v18 = vld [vmem:[%s1139_s21 + $0xc8] sm:$0xff] }
  0x46   : > { %v384_v2 = vsub.s32 1, %v379_v1  ;;  %v380_v3 = vsub.s32 0, %v379_v1  ;;  %v371_v19 = vand.u32 2147483647, %v307_v17  ;;  %v370_v20 = vand.u32 2147483647, %v306_v18 }
  0x47   : > { %v305_v21 = vld [vmem:[%s1139_s21 + $0xc0] sm:$0xff]  ;;  %v304_v22 = vld [vmem:[%s1139_s21 + $0xb8] sm:$0xff]  ;;  %v303_v25 = vld [vmem:[%s1139_s21 + $0xb0] sm:$0xff]  ;;  %s279_s26 = scalar_select %p278_p3, %s980_s18, 1 }
  0x48   : > { %v1150_v8 = vrot.slane %v377_v5, %v384_v2  ;;  %v1152_v10 = vrot.slane %v377_v5, %v380_v3  ;;  %v369_v23 = vand.u32 2147483647, %v305_v21  ;;  %v368_v24 = vand.u32 2147483647, %v304_v22  ;;  %v302_v26 = vld [vmem:[%s1139_s21 + $0xa8] sm:$0xff]  ;;  %v301_v29 = vld [vmem:[%s1139_s21 + $0xa0] sm:$0xff] }
  0x49   : > { %v367_v27 = vand.u32 2147483647, %v303_v25  ;;  %v366_v28 = vand.u32 2147483647, %v302_v26  ;;  %v300_v30 = vld [vmem:[%s1139_s21 + $0x98] sm:$0xff]  ;;  %v299_v34 = vld [vmem:[%s1139_s21 + $0x90] sm:$0xff]  ;;  %s280_s30 = scalar_lea.vmem %s1271_s3, %s279_s26 }
  0x4a   : > { %vm743_vm0 = vcmp.ge.s32.totalorder %v376_v7, %v1150_v8  ;;  %vm744_vm1 = vcmp.ge.s32.totalorder %v375_v9, %v1152_v10  ;;  %vm745_vm2 = vcmp.ge.s32.totalorder %v374_v13, %v1150_v8  ;;  %vm746_vm3 = vcmp.ge.s32.totalorder %v373_v14, %v1152_v10  ;;  %v451_v31 = vld [vmem:[#allocation2 + $0x8] sm:$0xff]  ;;  %v298_v35 = vld [vmem:[%s1139_s21 + $0x88] sm:$0xff]  ;;  %v297_v38 = vld [vmem:[%s1139_s21 + $0x80] sm:$0xff]  ;;  %s270_s10 = scalar_lea.vmem [#allocation7], %s671_s6  ;;  %s531_s23 = scalar_lea.sflag [#allocation4], %s1135_s0 }
  0x4b   : > { %674 = vmatprep.subr.msk.mxu0 %vm743_vm0, %v312_v4  ;;  %vm747_vm4 = vcmp.ge.s32.totalorder %v372_v16, %v1150_v8  ;;  %vm748_vm5 = vcmp.ge.s32.totalorder %v371_v19, %v1152_v10  ;;  %vm749_vm6 = vcmp.ge.s32.totalorder %v370_v20, %v1150_v8  ;;  %vm750_vm7 = vcmp.ge.s32.totalorder %v369_v23, %v1152_v10  ;;  %v296_v39 = vld [vmem:[%s1139_s21 + $0x78] sm:$0xff]  ;;  %v295_v42 = vld [vmem:[%s1139_s21 + $0x70] sm:$0xff]  ;;  %v294_v43 = vld [vmem:[%s1139_s21 + $0x68] sm:$0xff]  ;;  %s544_s12 = sshll.u32 %s270_s10, 4  ;;  %p1288_p5 = scmp.ne.s32.totalorder %s1280_s27, 0  ;;  %s545_s12 = int_to_ptr.vmem [resolvable:$true] %s544_s12 }
  0x4c   : > { %676 = vmatpush1.xpose.msk.msra.mxu0 %vm744_vm1, %v311_v6  ;;  %vm751_vm8 = vcmp.ge.s32.totalorder %v368_v24, %v1150_v8  ;;  %523 = vmatprep.mubr.f32.mxu0 %v451_v31  ;;  %vm752_vm9 = vcmp.ge.s32.totalorder %v367_v27, %v1152_v10  ;;  %v365_v32 = vand.u32 2147483647, %v301_v29  ;;  %vm753_vm10 = vcmp.ge.s32.totalorder %v366_v28, %v1150_v8  ;;  %v293_v46 = vld [vmem:[%s1139_s21 + $0x60] sm:$0xff]  ;;  %v292_v47 = vld [vmem:[%s1139_s21 + $0x58] sm:$0xff]  ;;  %v291_v50 = vld [vmem:[%s1139_s21 + $0x50] sm:$0xff]  ;;  %s904_s8 = scalar_lea.vmem %s545_s12, 128 }
  0x4d   : > { %678 = vmatprep.subr.msk.mxu0 %vm745_vm2, %v310_v11  ;;  %v364_v33 = vand.u32 2147483647, %v300_v30  ;;  %v363_v36 = vand.u32 2147483647, %v299_v34  ;;  %v362_v37 = vand.u32 2147483647, %v298_v35  ;;  %p905_p13 = scmp.ne.s32.totalorder %s545_s12, %s904_s8 }
  0x4e   : > { %vm754_vm11 = vcmp.ge.s32.totalorder %v365_v32, %v1152_v10  ;;  %v361_v40 = vand.u32 2147483647, %v297_v38  ;;  %v360_v41 = vand.u32 2147483647, %v296_v39  ;;  %v359_v44 = vand.u32 2147483647, %v295_v42 }
  0x4f   : > { %vm755_vm12 = vcmp.ge.s32.totalorder %v364_v33, %v1150_v8  ;;  %vm756_vm13 = vcmp.ge.s32.totalorder %v363_v36, %v1152_v10  ;;  %vm757_vm14 = vcmp.ge.s32.totalorder %v362_v37, %v1150_v8  ;;  %v358_v45 = vand.u32 2147483647, %v294_v43  ;;  %v290_v51 = vld [vmem:[%s1139_s21 + $0x48] sm:$0xff]  ;;  %v289_v54 = vld [vmem:[%s1139_s21 + $0x40] sm:$0xff]  ;;  %v288_v55 = vld [vmem:[%s1139_s21 + $0x38] sm:$0xff]  ;;  %p906_p1 = pnand %p905_p13, %p1288_p5  ;;  %s994_s9 = smov [#allocation7]  }
  0x50   : > { %680 = vmatpush1.xpose.msk.msra.mxu0 %vm746_vm3, %v309_v12  ;;  %vm758_vm15 = vcmp.ge.s32.totalorder %v361_v40, %v1152_v10  ;;  %vm759_vm0 = vcmp.ge.s32.totalorder %v360_v41, %v1150_v8  ;;  %vm760_vm1 = vcmp.ge.s32.totalorder %v359_v44, %v1152_v10  ;;  %v357_v48 = vand.u32 2147483647, %v293_v46  ;;  %v287_v58 = vld [vmem:[%s1139_s21 + $0x30] sm:$0xff]  ;;  %v286_v59 = vld [vmem:[%s1139_s21 + $0x28] sm:$0xff]  ;;  %v285_v62 = vld [vmem:[%s1139_s21 + $0x20] sm:$0xff]  ;;  %s908_s18 = sshll.u32 %s994_s9, 4  ;;  %s909_s18 = int_to_ptr.vmem [resolvable:$false] %s908_s18 }
  0x51   : > { %682 = vmatprep.subr.msk.mxu0 %vm747_vm4, %v308_v15  ;;  %vm761_vm2 = vcmp.ge.s32.totalorder %v358_v45, %v1150_v8  ;;  %v356_v49 = vand.u32 2147483647, %v292_v47  ;;  %v355_v52 = vand.u32 2147483647, %v291_v50  ;;  %v354_v53 = vand.u32 2147483647, %v290_v51  ;;  %p907_p12 = pneg %p906_p1  ;;  %p911_p7 = scmp.lt.s32.totalorder %s545_s12, %s909_s18 }
  0x52   : > { %vm762_vm3 = vcmp.ge.s32.totalorder %v357_v48, %v1152_v10  ;;  %v353_v56 = vand.u32 2147483647, %v289_v54  ;;  %v352_v57 = vand.u32 2147483647, %v288_v55  ;;  %v351_v60 = vand.u32 2147483647, %v287_v58 }
  0x53   : > { %vm763_vm4 = vcmp.ge.s32.totalorder %v356_v49, %v1150_v8  ;;  %v350_v61 = vand.u32 2147483647, %v286_v59  ;;  %v284_v63 = vld [vmem:[%s1139_s21 + $0x18] sm:$0xff]  ;;  %v349_v0 = vand.u32 2147483647, %v285_v62  ;;  %v283_v2 = vld [vmem:[%s1139_s21 + $0x10] sm:$0xff] }
  0x54   : > { %684 = vmatpush1.xpose.msk.msra.mxu0 %vm748_vm5, %v307_v17  ;;  %vm764_vm5 = vcmp.ge.s32.totalorder %v355_v52, %v1152_v10  ;;  %v348_v1 = vand.u32 2147483647, %v284_v63  ;;  %v282_v3 = vld [vmem:[%s1139_s21 + $0x8] sm:$0xff]  ;;  %v347_v4 = vand.u32 2147483647, %v283_v2  ;;  %v281_v6 = vld [vmem:[%s1139_s21] sm:$0xff] }
  0x55   : > { %686 = vmatprep.subr.msk.mxu0 %vm749_vm6, %v306_v18  ;;  %vm765_vm6 = vcmp.ge.s32.totalorder %v354_v53, %v1150_v8  ;;  %v346_v5 = vand.u32 2147483647, %v282_v3  ;;  %v345_v7 = vand.u32 2147483647, %v281_v6  ;;  %v450_v9 = vld [vmem:[#allocation2] sm:$0xff]  ;;  %s910_s21 = scalar_lea.vmem %s909_s18, 256 }
  0x56   : > { %v672_v11 = vld [vmem:[%s280_s30] ss:$0 sm:$0xff]  ;;  %p912_p8 = scmp.lt.s32.totalorder %s910_s21, %s904_s8 }
  0x58   : > { %688 = vmatpush1.xpose.msk.msra.mxu0 %vm750_vm7, %v305_v21  ;;  %vm766_vm7 = vcmp.ge.s32.totalorder %v353_v56, %v1152_v10  ;;  %p913_p9 = por %p912_p8, %p911_p7 }
  0x59   : > { %690 = vmatprep.subr.msk.mxu0 %vm751_vm8, %v304_v22  ;;  %vm767_vm8 = vcmp.ge.s32.totalorder %v352_v57, %v1150_v8 }
  0x5a   : > { %p914_p0 = pnand %p913_p9, %p907_p12 }
  0x5c   : > { %692 = vmatpush1.xpose.msk.msra.mxu0 %vm752_vm9, %v303_v25  ;;  %vm768_vm9 = vcmp.ge.s32.totalorder %v351_v60, %v1152_v10 }
  0x5d   : > { %694 = vmatprep.subr.msk.mxu0 %vm753_vm10, %v302_v26  ;;  %vm769_vm10 = vcmp.ge.s32.totalorder %v350_v61, %v1150_v8 }
  0x60   : > { %696 = vmatpush1.xpose.msk.msra.mxu0 %vm754_vm11, %v301_v29  ;;  %vm770_vm11 = vcmp.ge.s32.totalorder %v349_v0, %v1152_v10 }
  0x61   : > { %698 = vmatprep.subr.msk.mxu0 %vm755_vm12, %v300_v30  ;;  %vm771_vm12 = vcmp.ge.s32.totalorder %v348_v1, %v1150_v8 }
  0x64   : > { %700 = vmatpush1.xpose.msk.msra.mxu0 %vm756_vm13, %v299_v34  ;;  %vm772_vm13 = vcmp.ge.s32.totalorder %v347_v4, %v1152_v10 }
  0x65   : > { %702 = vmatprep.subr.msk.mxu0 %vm757_vm14, %v298_v35  ;;  %vm773_vm14 = vcmp.ge.s32.totalorder %v346_v5, %v1150_v8 }
  0x68   : > { %704 = vmatpush1.xpose.msk.msra.mxu0 %vm758_vm15, %v297_v38  ;;  %vm774_vm15 = vcmp.ge.s32.totalorder %v345_v7, %v1152_v10 }
  0x69   : > { %706 = vmatprep.subr.msk.mxu0 %vm759_vm0, %v296_v39 }
  0x6c   : > { %708 = vmatpush1.xpose.msk.msra.mxu0 %vm760_vm1, %v295_v42 }
  0x6d   : > { %710 = vmatprep.subr.msk.mxu0 %vm761_vm2, %v294_v43 }
  0x70   : > { %712 = vmatpush1.xpose.msk.msra.mxu0 %vm762_vm3, %v293_v46 }
  0x71   : > { %714 = vmatprep.subr.msk.mxu0 %vm763_vm4, %v292_v47 }
  0x74   : > { %716 = vmatpush1.xpose.msk.msra.mxu0 %vm764_vm5, %v291_v50 }
  0x75   : > { %718 = vmatprep.subr.msk.mxu0 %vm765_vm6, %v290_v51 }
  0x78   : > { %720 = vmatpush1.xpose.msk.msra.mxu0 %vm766_vm7, %v289_v54 }
  0x79   : > { %722 = vmatprep.subr.msk.mxu0 %vm767_vm8, %v288_v55 }
  0x7c   : > { %724 = vmatpush1.xpose.msk.msra.mxu0 %vm768_vm9, %v287_v58 }
  0x7d   : > { %726 = vmatprep.subr.msk.mxu0 %vm769_vm10, %v286_v59 }
  0x80   : > { %728 = vmatpush1.xpose.msk.msra.mxu0 %vm770_vm11, %v285_v62 }
  0x81   : > { %730 = vmatprep.subr.msk.mxu0 %vm771_vm12, %v284_v63 }
  0x84   : > { %732 = vmatpush1.xpose.msk.msra.mxu0 %vm772_vm13, %v283_v2 }
  0x85   : > { %734 = vmatprep.subr.msk.mxu0 %vm773_vm14, %v282_v3 }
  0x88   : > { %736 = vmatpush1.xpose.msk.msra.mxu0 %vm774_vm15, %v281_v6 }
  0x8b   : > { %524 = vmatmul.mubr.f32.vlgmr.msra.gmra.mxu0 %v450_v9 }
 0x14b   : > { %v525_v8 = vpop.f32.mrf.mxu0 }
 0x14c   : > { %v526_v12 = vadd.f32 %v672_v11, %v525_v8 }
 0x14d   : > { %v527_v10 = vpop.f32.mrf.mxu0 }
 0x14e   : > { %529 = vst [vmem:[%s270_s10] sm:$0xff] %v526_v12 }
 0x14f   : > { %917 = shalt.err (!%p914_p0)
}
 0x150   : > { %s918_s24 = scalar_lea.hbm %s1226_s13, 128  ;;  %s922_s26 = scalar_lea.hbm %s1272_s4, 256 }
 0x151   : > { %p919_p2 = scmp.ne.s32.totalorder %s1226_s13, %s918_s24  ;;  %p923_p11 = scmp.lt.s32.totalorder %s1226_s13, %s1272_s4 }
 0x152   : > { %p924_p4 = scmp.lt.s32.totalorder %s922_s26, %s918_s24 }
 0x153   : > { %p920_p6 = pnand %p919_p2, %p1288_p5 }
 0x154   : > { %p925_p3 = por %p924_p4, %p923_p11 }
 0x155   : > { %p921_p10 = pneg %p920_p6 }
 0x157   : > { %p926_p13 = pnand %p925_p3, %p921_p10 }
 0x159   : > { %929 = shalt.err (!%p926_p13)
}
 0x15a   : > { %781 = dma.vmem_to_hbm [thread:$0]  (%p1288_p5), %s545_s12, 128, %s1226_s13, %s531_s23  }
 0x15b PF: > { %s556_s25 = sand.u32 1, %s968_s15   ;;  %p1289_p1 = scmp.ne.s32.totalorder %s1281_s28, 0 }
 0x15c   : > { %p1290_p12 = scmp.ge.s32.totalorder %s988_s20, 2  ;;  %s557_s30 = scalar_lea.sflag [#allocation4], %s556_s25 }
 0x15e   : > { %p792_p7 = pnand %p1290_p12, %p1289_p1 }
 0x160   : > { %p793_p8 = pneg %p792_p7 }
 0x162   : > { %963 = dma.done.wait (%p793_p8), %s557_s30, 128  }
 0x163   : > { %965 = vsyncadd (%p793_p8), %s557_s30, 4294967168  ;;  %s21_s20 = sadd.s32 1, %s988_s20   ;;  %s1291_s27 = sld [smem:[#allocation11_spill]] }
 0x164   : > { %p18_p9 = scmp.ge.s32.totalorder %s21_s20, 4   ;;  %s1292_s15 = smov %s972_s16 }
 0x165   : > { %s1293_s16 = smov %s976_s17  ;;  %s1294_s17 = smov %s1122_s11 }
 0x166   : > { %s1295_s18 = smov %s984_s19  ;;  %20 = sbr.rel (!%p18_p9) target bundleno = 9 (0x9), region = 92 }
 0x169   : > { %s1296_s19 = smov %s1291_s27 }
 0x16b   :  { %562 = vsyncpa [#allocation3], 1 }
 0x16c   :  { %564 = vsyncpa [#allocation3 + $0x1], 1 }
 0x16d   :  { %565 = vsyncpa [#allocation6], 1 }
 0x16e   :  { %567 = vsyncpa [#allocation6 + $0x1], 1 }
 0x16f   :  { %568 = vsyncpa [#allocation4], 1 }
 0x170   :  { %570 = vsyncpa [#allocation4 + $0x1], 1 }

</bundles_post_ra>
